<compile_context>
chip_gen: v5e
topology: v5e:2x2
jax: 0.10.0
libtpu: 0.0.40
codegen_flags: <defaults>
</compile_context>

<pallas_src>
import math
from functools import partial

import jax
import jax.numpy as jnp
from jax.experimental import pallas as pl
from jax.experimental.pallas import tpu as pltpu


def _drop_path_kernel(x_ref, scale_ref, o_ref):
    """One grid step: multiply a (TB, TF) tile by its per-row scales (TB, 1)."""
    o_ref[...] = x_ref[...] * scale_ref[...]


def _pick_tile(dim: int, base: int, cap: int) -> int:
    """Largest tile <= cap that is a multiple of `base` and divides `dim`.
    Falls back to the full extent when `dim` is not a multiple of `base`
    (a block equal to the full array dim is always legal)."""
    if dim <= 0 or dim % base != 0:
        return dim
    t = min(dim, cap)
    t -= t % base
    while t > base and (dim % t != 0):
        t -= base
    if dim % t != 0:
        t = dim
    return t


def drop_path_pallas(x, key, drop_prob: float = 0.0, training: bool = False):
    """Pallas equivalent of torch drop_path(x, drop_prob, training)."""
    if drop_prob == 0.0 or not training:
        return x

    keep_prob = 1.0 - float(drop_prob)
    B = x.shape[0]
    F = int(math.prod(x.shape[1:])) if x.ndim > 1 else 1
    x2 = x.reshape(B, F)

    # Per-sample Bernoulli draw done once in plain JAX (B floats, negligible).
    u = jax.random.uniform(key, (B, 1), dtype=jnp.float32)
    mask = jnp.floor(keep_prob + u)                # 1.0 with prob keep_prob
    scale = (mask / keep_prob).astype(x.dtype)     # 0 or 1/keep_prob, (B, 1)

    # Lane/sublane-dense tiling.  Tile bytes (f32, 128x2048 = 1 MiB) stay far
    # under the scoped VMEM limit even with double-buffered in+out on v7x.
    TF = _pick_tile(F, 128, 2048)
    TB = _pick_tile(B, 8, 128)
    grid = (B // TB, F // TF)

    out2 = pl.pallas_call(
        _drop_path_kernel,
        out_shape=jax.ShapeDtypeStruct((B, F), x.dtype),
        grid=grid,
        in_specs=[
            pl.BlockSpec((TB, TF), lambda i, j: (i, j)),
            pl.BlockSpec((TB, 1), lambda i, j: (i, 0)),
        ],
        out_specs=pl.BlockSpec((TB, TF), lambda i, j: (i, j)),
        compiler_params=pltpu.CompilerParams(
            dimension_semantics=("parallel", "parallel"),
        ),
    )(x2, scale)

    return out2.reshape(x.shape)


class DropPath:
    """Mirror of the PyTorch DropPath module (stochastic depth per sample)."""

    def __init__(self, drop_prob=None):
        self.drop_prob = 0.0 if drop_prob is None else float(drop_prob)
        self.training = True

    def __call__(self, x, seed: int = 0):
        key = jax.random.PRNGKey(seed)
        return drop_path_pallas(x, key, self.drop_prob, self.training)


if __name__ == "__main__":
    key = jax.random.PRNGKey(0)
    B, N, D = 2, 8, 32                      # ViT-style activation (B, N, D)
    x = jax.random.normal(key, (B, N, D), dtype=jnp.float32)

    drop_prob = 0.25
    module = DropPath(drop_prob)
    module.training = True

    seed = 42
    out = jax.block_until_ready(module(x, seed=seed))

    # --- correctness checks against the reference semantics ---
    keep_prob = 1.0 - drop_prob
    ok = (out.shape == x.shape) and (out.dtype == x.dtype)

    # Each sample must be either exactly zero (dropped) or x / keep_prob (kept).
    for b in range(B):
        ob, xb = out[b], x[b]
        is_zero = bool(jnp.all(ob == 0.0))
        is_scaled = bool(jnp.allclose(ob, xb / keep_prob, rtol=1e-5, atol=1e-5))
        ok = ok and (is_zero or is_scaled)

    # Exact match against a plain-JAX reference using the same random draw.
    u_ref = jax.random.uniform(jax.random.PRNGKey(seed), (B, 1), dtype=jnp.float32)
    scale_ref = (jnp.floor(keep_prob + u_ref) / keep_prob).astype(x.dtype)
    ref = (x.reshape(B, -1) * scale_ref).reshape(x.shape)
    ok = ok and bool(jnp.allclose(out, ref, rtol=1e-6, atol=1e-6))

    # eval mode / drop_prob=0 must be identity
    module.training = False
    out_eval = jax.block_until_ready(module(x, seed=seed))
    ok = ok and bool(jnp.array_equal(out_eval, x))

    module.training = True
    module.drop_prob = 0.0
    out_p0 = jax.block_until_ready(module(x, seed=seed))
    ok = ok and bool(jnp.array_equal(out_p0, x))

    print("KERNEL_OK" if ok else "KERNEL_MISMATCH")
</pallas_src>

<mosaic_0001>
module attributes {stable_mosaic.version = 11 : i64} {
  func.func @_drop_path_kernel(%arg0: i32, %arg1: i32, %arg2: memref<2x256xf32, #tpu.memory_space<vmem>>, %arg3: memref<2x1xf32, #tpu.memory_space<vmem>>, %arg4: memref<2x256xf32, #tpu.memory_space<vmem>>) attributes {dimension_semantics = [#tpu.dimension_semantics<parallel>, #tpu.dimension_semantics<parallel>], iteration_bounds = array<i64: 1, 1>, scalar_prefetch = 0 : i64, scratch_operands = 0 : i64, tpu.core_type = #tpu.core_type<tc>, window_params = [{transform_indices = @transform_0, window_bounds = array<i64: 2, 256>}, {transform_indices = @transform_1, window_bounds = array<i64: 2, 1>}, {transform_indices = @transform_2, window_bounds = array<i64: 2, 256>}]} {
    %c0 = arith.constant 0 : index
    %c0_0 = arith.constant 0 : index
    %0 = vector.load %arg2[%c0, %c0_0] : memref<2x256xf32, #tpu.memory_space<vmem>>, vector<2x256xf32>
    %c0_1 = arith.constant 0 : index
    %c0_2 = arith.constant 0 : index
    %1 = vector.load %arg3[%c0_1, %c0_2] : memref<2x1xf32, #tpu.memory_space<vmem>>, vector<2x1xf32>
    %2 = vector.broadcast %1 : vector<2x1xf32> to vector<2x256xf32>
    %3 = arith.mulf %0, %2 : vector<2x256xf32>
    %c0_3 = arith.constant 0 : index
    %c0_4 = arith.constant 0 : index
    %4 = vector.load %arg4[%c0_3, %c0_4] : memref<2x256xf32, #tpu.memory_space<vmem>>, vector<2x256xf32>
    tpu.vector_store %arg4[%c0_3, %c0_4], %3 {strides = array<i32>} : memref<2x256xf32, #tpu.memory_space<vmem>>, vector<2x256xf32>,
    return
  }
  func.func @transform_0(%arg0: i32, %arg1: i32) -> (i32, i32) {
    %c0_i32 = arith.constant 0 : i32
    return %arg0, %arg1 : i32, i32
  }
  func.func @transform_1(%arg0: i32, %arg1: i32) -> (i32, i32) {
    %c0_i32 = arith.constant 0 : i32
    %c0_i32_0 = arith.constant 0 : i32
    return %arg0, %c0_i32 : i32, i32
  }
  func.func @transform_2(%arg0: i32, %arg1: i32) -> (i32, i32) {
    %c0_i32 = arith.constant 0 : i32
    return %arg0, %arg1 : i32, i32
  }
}

</mosaic_0001>

<bundles_post_ra>
// kernel: tpu_custom_call.1
= control target key start
LH: loop header
LB: loop body
LE: loop exit
PB: predicated region body
PF: predicated region fallthrough
CT: control target
= control target key end

     0   :  { %7 = vsyncpa [#allocation3], 0  ;;  %s141_s0 = inlined_call_operand.hbm [shape: f32[2,256], index: 0, kind: input, shape index: {}]   ;;  %s142_s1 = inlined_call_operand.vmem [shape: f32[2,1], index: 1, kind: input, shape index: {}]   ;;  %s143_s2 = inlined_call_operand.hbm [shape: f32[2,256], index: 2, kind: output, shape index: {}]  }
   0x1   :  { %8 = vsyncpa [#allocation4], 0  ;;  %s14_s11 = sshll.u32 %s141_s0, 4  ;;  %s113_s12 = smov [#allocation2]   ;;  %s15_s11 = int_to_ptr.hbm [resolvable:$true] %s14_s11 }
   0x2   :  { %s16_s13 = sshll.u32 %s113_s12, 4  ;;  %s17_s13 = int_to_ptr.vmem [resolvable:$true] %s16_s13 }
   0x3   :  { %19 = dma.hbm_to_vmem [thread:$0]  %s15_s11, 64, %s17_s13, [#allocation3]  }
   0x4   :  { %109 = dma.done.wait [#allocation3], 64  }
   0x5   :  { %110 = vsyncadd [#allocation3], 4294967232  ;;  %v114_v0 = vmov 0   ;;  %v27_v1 = vld [vmem:[%s142_s1] sm:$0x3]  ;;  %s116_s0 = smov [#allocation5]  }
   0x6   :  { %60 = vset.pattern.permute.xlu0 %v114_v0  ;;  %v115_v2 = vmov 269488144   ;;  %v26_v6 = vld [vmem:[#allocation2] sm:$0xf]  ;;  %s44_s16 = sshll.u32 %s116_s0, 4  ;;  %s46_s19 = sshll.u32 %s143_s2, 4  ;;  %s45_s16 = int_to_ptr.vmem [resolvable:$true] %s44_s16  ;;  %s47_s19 = int_to_ptr.hbm [resolvable:$true] %s46_s19 }
   0x7   :  { %30 = vperm.xlu0 %60, %v27_v1   ;;  %v33_v3 = vunpack.c.l.s4 %v115_v2 }
   0x9   :  { %v34_v4 = vunpack.c.0.s8 %v33_v3 }
  0x79   :  { %v31_v5 = vpop.permute.xlu0 %30 }
  0x7a   :  { %v35_v7 = vperm.slane %v31_v5, %v34_v4 }
  0x7c   :  { %v37_v8 = vmul.f32 %v35_v7, %v26_v6 }
  0x7e   :  { %38 = vst [vmem:[#allocation5] sm:$0xf] %v37_v8 }
  0x7f   :  { %49 = dma.vmem_to_hbm [thread:$0]  %s45_s16, 64, %s47_s19, [#allocation4]  }
  0x80   :  { %111 = dma.done.wait [#allocation4], 64  }
  0x81   :  { %112 = vsyncadd [#allocation4], 4294967232 }
  0x82   :  { %54 = vsyncpa [#allocation3], 1 }
  0x83   :  { %55 = vsyncpa [#allocation4], 1 }

</bundles_post_ra>
